<compile_context>
chip_gen: v7x
topology: tpu7x:2x2x1
jax: 0.10.0
libtpu: 0.0.40
codegen_flags: <defaults>
</compile_context>

<pallas_src>
import jax
import jax.numpy as jnp
from jax.experimental import pallas as pl
from jax.experimental.pallas import tpu as pltpu


_LANES = 128
_VMEM_LIMIT_BYTES = 32 * 1024 * 1024    # >= usage (~<20 MiB), <= physical on every chip
_X_TILE_BYTES_TARGET = 4 * 1024 * 1024  # per-buffer target for the streamed x row tile
_MAX_ROW_TILE = 16 * 1024               # bounds in-kernel temporaries / relayout size
_SMALL_PROBLEM_BYTES = 512 * 1024       # below this, skip the standalone Pallas launch


def _decision_head_kernel(x_ref, w_ref, b_ref, o_ref):
    # x_ref: (TM, H) row tile of the flattened (B*T, H) input, VMEM (streamed)
    # w_ref: (H, 1)  linear weight, VMEM (resident across all grid steps)
    # b_ref: (1, 1)  linear bias, SMEM scalar
    # o_ref: (1, 1, TM) lane-dense sigmoid(x @ w + b), cast back to the input dtype
    tm = o_ref.shape[-1]
    logits = jnp.dot(x_ref[...], w_ref[...], preferred_element_type=jnp.float32)  # (TM, 1)
    # Sublane->lane relayout of the per-row scalars: makes the output block lane-dense so
    # the store and the output DMA are contiguous instead of 4-byte strided.
    logits_t = jnp.transpose(logits)                                  # (1, TM), f32
    logits_t = logits_t + b_ref[0, 0].astype(jnp.float32)
    probs = jax.nn.sigmoid(logits_t)                                  # dense: TM/128 vregs
    o_ref[...] = probs.astype(o_ref.dtype).reshape(1, 1, tm)


def _round_up(n, m):
    return ((n + m - 1) // m) * m


def _choose_row_tile(M, H, itemsize, row_tile):
    # Large, lane-width-aligned row tile: big enough to amortize per-step overhead and
    # keep the streamed DMA efficient, small enough for comfortable VMEM double-buffering.
    if row_tile is None:
        row_tile = min(max(1, _X_TILE_BYTES_TARGET // max(1, H * itemsize)), _MAX_ROW_TILE)
    tm = _round_up(row_tile, _LANES)       # lane-dense output tiles
    tm = min(tm, _round_up(M, 8))          # never exceed the (8-padded) problem size
    return max(8, tm)                      # always a multiple of 8 (sublane constraint)


def decision_head_forward(x, weight, bias, *, force_pallas=False, row_tile=None):
    """x: (B, T, H); weight: (H, 1); bias: (1,).  Returns sigmoid(x @ W + b) of shape (B, T)."""
    B, T, H = x.shape
    M = B * T
    x2d = x.reshape(M, H)
    w = weight.astype(x.dtype)          # keep the dot in the activation dtype (bf16 stays bf16)

    # Small-problem fallback: a standalone Pallas launch is strictly slower than a fused
    # XLA epilogue when the whole problem is a few KiB.
    if not force_pallas and M * H * x.dtype.itemsize < _SMALL_PROBLEM_BYTES:
        logits = jnp.dot(x2d, w, preferred_element_type=jnp.float32) + bias.astype(jnp.float32)
        return jax.nn.sigmoid(logits).astype(x.dtype).reshape(B, T)

    tm = _choose_row_tile(M, H, x.dtype.itemsize, row_tile)
    nt = pl.cdiv(M, tm)
    bias2d = bias.reshape(1, 1)

    out = pl.pallas_call(
        _decision_head_kernel,
        out_shape=jax.ShapeDtypeStruct((nt, 1, tm), x.dtype),
        grid_spec=pltpu.PrefetchScalarGridSpec(
            num_scalar_prefetch=0,
            grid=(nt,),
            in_specs=[
                pl.BlockSpec((tm, H), lambda i: (i, 0)),   # streamed, double-buffered row tiles
                pl.BlockSpec((H, 1), lambda i: (0, 0)),    # weight resident across all steps
                pl.BlockSpec(memory_space=pltpu.SMEM),     # scalar bias in SMEM
            ],
            out_specs=pl.BlockSpec((1, 1, tm), lambda i: (i, 0, 0)),  # lane-dense output row
        ),
        compiler_params=pltpu.CompilerParams(
            # Row tiles are independent: "parallel" lets v7x shard them across its two
            # TensorCores; neutral on single-TC v5e/v6e.
            dimension_semantics=("parallel",),
            vmem_limit_bytes=_VMEM_LIMIT_BYTES,
        ),
    )(x2d, w, bias2d)

    # Drop the (< tm) rows of tail padding and restore (B, T).
    return out.reshape(nt * tm)[:M].reshape(B, T)


def _ref_forward(x, weight, bias):
    logits = jnp.einsum("bth,ho->bto", x.astype(jnp.float32), weight.astype(jnp.float32))
    return jax.nn.sigmoid(logits + bias.astype(jnp.float32))[..., 0]


if __name__ == "__main__":
    key = jax.random.PRNGKey(0)

    # --- Test 1: small demo shape (batch=2, seq=8, hidden=32), force the Pallas path. ---
    B, T, H = 2, 8, 32
    kx, kw, kb = jax.random.split(key, 3)
    x = jax.random.normal(kx, (B, T, H), dtype=jnp.float32)

    # Deterministic params mimicking nn.Linear(H, 1) + the custom bias init:
    #   weight ~ U(-1/sqrt(H), 1/sqrt(H)); bias ~ N(mean=-20.0, std=0.1)
    bound = 1.0 / jnp.sqrt(jnp.float32(H))
    weight = jax.random.uniform(kw, (H, 1), dtype=jnp.float32, minval=-bound, maxval=bound)
    bias = -20.0 + 0.1 * jax.random.normal(kb, (1,), dtype=jnp.float32)

    out = decision_head_forward(x, weight, bias, force_pallas=True)
    out = jax.block_until_ready(out)
    ref = _ref_forward(x, weight, bias)
    assert out.shape == (B, T)
    assert jnp.allclose(out, ref, atol=1e-6, rtol=1e-6)

    # --- Test 2: multi-step grid with a partial last tile (M % TM != 0), f32. ---
    B2, T2, H2 = 3, 1000, 64
    kx2, kw2, kb2 = jax.random.split(jax.random.PRNGKey(1), 3)
    x2 = jax.random.normal(kx2, (B2, T2, H2), dtype=jnp.float32)
    bound2 = 1.0 / jnp.sqrt(jnp.float32(H2))
    weight2 = jax.random.uniform(kw2, (H2, 1), dtype=jnp.float32, minval=-bound2, maxval=bound2)
    bias2 = -20.0 + 0.1 * jax.random.normal(kb2, (1,), dtype=jnp.float32)

    out2 = decision_head_forward(x2, weight2, bias2, force_pallas=True, row_tile=256)
    out2 = jax.block_until_ready(out2)
    ref2 = _ref_forward(x2, weight2, bias2)
    assert out2.shape == (B2, T2)
    assert jnp.allclose(out2, ref2, atol=1e-6, rtol=1e-6)

    # --- Test 3: bf16 activations (halves HBM traffic on the mem-bound stream). ---
    out3 = decision_head_forward(x2.astype(jnp.bfloat16), weight2, bias2,
                                 force_pallas=True, row_tile=256)
    out3 = jax.block_until_ready(out3)
    assert out3.shape == (B2, T2)
    assert jnp.allclose(out3.astype(jnp.float32), ref2, rtol=5e-2, atol=1e-8)

    # --- Test 4: auto-picked tile on a larger flattened problem. ---
    out4 = decision_head_forward(x2, weight2, bias2, force_pallas=True)
    out4 = jax.block_until_ready(out4)
    assert jnp.allclose(out4, ref2, atol=1e-6, rtol=1e-6)

    print("KERNEL_OK")
</pallas_src>

<mosaic_0001>
module attributes {stable_mosaic.version = 11 : i64} {
  func.func @_decision_head_kernel(%arg0: i32, %arg1: memref<16x32xf32, #tpu.memory_space<vmem>>, %arg2: memref<32x1xf32, #tpu.memory_space<vmem>>, %arg3: memref<1x1xf32, #tpu.memory_space<smem>>, %arg4: memref<1x1x16xf32, #tpu.memory_space<vmem>>) attributes {dimension_semantics = [#tpu.dimension_semantics<parallel>], iteration_bounds = array<i64: 1>, scalar_prefetch = 0 : i64, scratch_operands = 0 : i64, tpu.core_type = #tpu.core_type<tc>, window_params = [{transform_indices = @transform_0, window_bounds = array<i64: 16, 32>}, {pipeline_mode = #tpu.pipeline_mode<synchronous>, transform_indices = @transform_1, window_bounds = array<i64: 32, 1>}, {transform_indices = @transform_2, window_bounds = array<i64: 1, 1>}, {transform_indices = @transform_3, window_bounds = array<i64: 1, 1, 16>}]} {
    %c0 = arith.constant 0 : index
    %c0_0 = arith.constant 0 : index
    %0 = vector.load %arg1[%c0, %c0_0] : memref<16x32xf32, #tpu.memory_space<vmem>>, vector<16x32xf32>
    %c0_1 = arith.constant 0 : index
    %c0_2 = arith.constant 0 : index
    %1 = vector.load %arg2[%c0_1, %c0_2] : memref<32x1xf32, #tpu.memory_space<vmem>>, vector<32x1xf32>
    %cst = arith.constant dense<0.000000e+00> : vector<16x1xf32>
    %2 = tpu.matmul %0, %1, %cst {dimension_numbers = #tpu.dot_dimension_numbers<[1], [0], [0], [1], [0, 0, 1, 1], [], []>} : vector<16x32xf32>, vector<32x1xf32>, vector<16x1xf32> -> vector<16x1xf32>
    %3 = tpu.transpose %2, [1, 0] : vector<16x1xf32> -> vector<1x16xf32>
    %c0_3 = arith.constant 0 : index
    %c0_4 = arith.constant 0 : index
    %4 = memref.load %arg3[%c0_3, %c0_4] : memref<1x1xf32, #tpu.memory_space<smem>>
    %5 = vector.broadcast %4 : f32 to vector<1x16xf32>
    %6 = arith.addf %3, %5 : vector<1x16xf32>
    %7 = arith.negf %6 : vector<1x16xf32>
    %8 = math.exp %7 : vector<1x16xf32>
    %cst_5 = arith.constant 1.000000e+00 : f32
    %9 = vector.broadcast %cst_5 : f32 to vector<1x16xf32>
    %10 = arith.addf %9, %8 : vector<1x16xf32>
    %11 = arith.divf %9, %10 : vector<1x16xf32>
    %12 = vector.shape_cast %11 : vector<1x16xf32> to vector<1x1x16xf32>
    %c0_6 = arith.constant 0 : index
    %c0_7 = arith.constant 0 : index
    %c0_8 = arith.constant 0 : index
    %13 = vector.load %arg4[%c0_6, %c0_7, %c0_8] : memref<1x1x16xf32, #tpu.memory_space<vmem>>, vector<1x1x16xf32>
    tpu.vector_store %arg4[%c0_6, %c0_7, %c0_8], %12 {strides = array<i32>} : memref<1x1x16xf32, #tpu.memory_space<vmem>>, vector<1x1x16xf32>,
    return
  }
  func.func @transform_0(%arg0: i32) -> (i32, i32) {
    %c0_i32 = arith.constant 0 : i32
    %c0_i32_0 = arith.constant 0 : i32
    return %arg0, %c0_i32 : i32, i32
  }
  func.func @transform_1(%arg0: i32) -> (i32, i32) {
    %c0_i32 = arith.constant 0 : i32
    %c0_i32_0 = arith.constant 0 : i32
    %c0_i32_1 = arith.constant 0 : i32
    return %c0_i32, %c0_i32_0 : i32, i32
  }
  func.func @transform_2(%arg0: i32) -> (i32, i32) {
    %c0_i32 = arith.constant 0 : i32
    %c0_i32_0 = arith.constant 0 : i32
    %c0_i32_1 = arith.constant 0 : i32
    return %c0_i32, %c0_i32_0 : i32, i32
  }
  func.func @transform_3(%arg0: i32) -> (i32, i32, i32) {
    %c0_i32 = arith.constant 0 : i32
    %c0_i32_0 = arith.constant 0 : i32
    %c0_i32_1 = arith.constant 0 : i32
    return %arg0, %c0_i32, %c0_i32_0 : i32, i32, i32
  }
}

</mosaic_0001>

<bundles_post_ra>
// kernel: tpu_custom_call.1
= control target key start
LH: loop header
LB: loop body
LE: loop exit
PB: predicated region body
PF: predicated region fallthrough
CT: control target
= control target key end

     0   :  { %vm22_vm0 = vcmask 261120   ;;  %s273_s0 = inlined_call_operand.vmem [shape: f32[16,32], index: 0, kind: input, shape index: {}]   ;;  %s274_s1 = inlined_call_operand.vmem [shape: f32[32,1], index: 1, kind: input, shape index: {}]   ;;  %s275_s2 = inlined_call_operand.<no memory space> [shape: f32[1,1], index: 2, kind: input, shape index: {}]   ;;  %s276_s3 = inlined_call_operand.hbm [shape: f32[1,1,16], index: 3, kind: output, shape index: {}]  }
   0x1   :  { %v18_v0 = vld [vmem:[%s274_s1] sm:$0xff]  ;;  %v19_v1 = vld [vmem:[%s274_s1 + $0x8] sm:$0xff]  ;;  %v20_v2 = vld [vmem:[%s274_s1 + $0x10] sm:$0xff] }
   0x2   :  { %v181_v3 = vpack.c.bf16 %v19_v1, %v18_v0  ;;  %v21_v4 = vld [vmem:[%s274_s1 + $0x18] sm:$0xff]  ;;  %v16_v5 = vld [vmem:[%s273_s0] sm:$0xff] }
   0x3   :  { %v185_v6 = vpack.c.bf16 %v21_v4, %v20_v2  ;;  %178 = vmatprep.mubr.msk.f32.mxu0 %vm22_vm0, %v16_v5 }
   0x4   :  { %9 = vsyncpa [#allocation4], 0  ;;  %182 = vmatprep.subr.bf16.mxu0 %v181_v3  ;;  %v17_v7 = vld [vmem:[%s273_s0 + $0x8] sm:$0xff]  ;;  %v137_v10 = vstv %s275_s2  ;;  %s219_s25 = smov [#allocation3]   ;;  %vm145_vm1 = vcmask 122880  }
   0x5   :  { %184 = vmatpush3.bf16.msra.mxu0 %v181_v3  ;;  %s153_s26 = sshll.u32 %s219_s25, 4  ;;  %s154_s26 = int_to_ptr.vmem [resolvable:$true] %s153_s26 }
   0x6   :  { %186 = vmatprep.subr.bf16.mxu0 %v185_v6  ;;  %s195_s0 = scalar_lea.vmem %s154_s26, 16  ;;  %s199_s27 = scalar_lea.vmem %s154_s26, 32 }
   0x7   :  { %p196_p0 = scmp.ne.s32.totalorder %s154_s26, %s195_s0  ;;  %p200_p1 = scmp.lt.s32.totalorder %s154_s26, %s154_s26 }
   0x8   :  { %p201_p2 = scmp.lt.s32.totalorder %s199_s27, %s195_s0 }
   0x9   :  { %188 = vmatpush3.bf16.msra.mxu0 %v185_v6 }
   0xa   :  { %p202_p3 = por %p201_p2, %p200_p1 }
   0xc   :  { %179 = vmatmul.mubr.msk.f32.vlgmr.msra.gmra.mrb[0].mxu0 %vm22_vm0, %v17_v7  ;;  %p203_p4 = pnand %p202_p3, %p196_p0 }
  0xdf   :  { %v180_v8 = vpop.f32.mrb[0].mxu0 }
  0xe0   :  { %v95_v9 = vpop.f32.mrb[1].mxu0 }
  0xe1   :  { %104 = vxpose.xlu0.b32.start [1/2] (short) (narrow) %v95_v9, 8 }
  0xe5   :  { %105 = vxpose.xlu0.b32.end [2/2] (short) (narrow) %v180_v8, 8 }
 0x161   :  { %v120_v11 = vpop.trf.xlu0 }
 0x162   :  { %v138_v12 = vadd.f32 %v137_v10, %v120_v11 }
 0x164   :  { %v163_v13 = vmul.f32 -1.442695, %v138_v12 }
 0x166   :  { %191 = vpow2.f32 %v163_v13 }
 0x170   :  { %v192_v14 = vpop.eup %191 }
 0x171   :  { %v142_v15 = vadd.f32 1.0, %v192_v14 }
 0x173   :  { %193 = vrcp.f32 %v142_v15 }
 0x17d   :  { %v194_v16 = vpop.eup %193 }
 0x17e   :  { %146 = vst.msk [vmem:[#allocation3] sm:$0x1] %vm145_vm1, %v194_v16 }
 0x17f   :  { %206 = shalt.err (!%p203_p4)
}
 0x180   :  { %s207_s29 = scalar_lea.hbm %s276_s3, 16 }
 0x181   :  { %p208_p5 = scmp.ne.s32.totalorder %s276_s3, %s207_s29  ;;  %p211_p6 = scmp.lt.u32.totalorder %s207_s29, %s276_s3 }
 0x183   :  { %p213_p7 = pnand %p211_p6, %p208_p5 }
 0x185   :  { %216 = shalt.err (!%p213_p7)
}
 0x186   :  { %156 = dma.vmem_to_hbm [thread:$0]  %s154_s26, 16, %s276_s3, [#allocation4]  }
 0x187   :  { %217 = dma.done.wait [#allocation4], 16  }
 0x188   :  { %218 = vsyncadd [#allocation4], 4294967280 }
 0x189   :  { %160 = vsyncpa [#allocation4], 1 }

</bundles_post_ra>
